<compile_context>
chip_gen: v5e
topology: v5e:2x2
jax: 0.10.0
libtpu: 0.0.40
codegen_flags: <defaults>
</compile_context>

<pallas_src>
import functools

import jax
import jax.numpy as jnp
from jax import lax
from jax.experimental import pallas as pl
from jax.experimental.pallas import tpu as pltpu

NEG_INF = float("-inf")


def _flash_attn_kernel(xq_ref, xk_ref, wk_ref, wq_ref, wv_ref, o_ref,
                       q_s, m_s, l_s, acc_s, *, tq, tk):
    # xq_ref: (tq, C) query rows;  xk_ref: (tk, C) key/value rows
    # wk/wq/wv: (C, Hp);  o_ref: (tq, Hp)
    qi = pl.program_id(1)
    kj = pl.program_id(2)
    nk = pl.num_programs(2)

    @pl.when(kj == 0)
    def _init():
        m_s[...] = jnp.full_like(m_s, NEG_INF)
        l_s[...] = jnp.zeros_like(l_s)
        acc_s[...] = jnp.zeros_like(acc_s)
        # Query projection computed once per (batch, query-tile) and cached.
        # The C**-0.5 scale is already folded into wq by the wrapper.
        q_s[...] = jnp.dot(xq_ref[...], wq_ref[...],
                           preferred_element_type=jnp.float32).astype(q_s.dtype)

    def _attend(apply_mask):
        xk = xk_ref[...]
        k = jnp.dot(xk, wk_ref[...],
                    preferred_element_type=jnp.float32).astype(xk.dtype)
        v = jnp.dot(xk, wv_ref[...],
                    preferred_element_type=jnp.float32).astype(xk.dtype)

        # scores: contract the head axis of q and k directly (no k.T relayout)
        s = lax.dot_general(q_s[...], k, (((1,), (1,)), ((), ())),
                            preferred_element_type=jnp.float32)  # (tq, tk)

        if apply_mask:
            # Only the diagonal block pays the iota/compare/select VPU cost.
            row = qi * tq + lax.broadcasted_iota(jnp.int32, (tq, tk), 0)
            col = kj * tk + lax.broadcasted_iota(jnp.int32, (tq, tk), 1)
            s = jnp.where(col <= row, s, NEG_INF)

        # online softmax update
        m_prev = m_s[...]
        m_new = jnp.maximum(m_prev, jnp.max(s, axis=-1, keepdims=True))
        alpha = jnp.exp(m_prev - m_new)
        p = jnp.exp(s - m_new)

        l_s[...] = alpha * l_s[...] + jnp.sum(p, axis=-1, keepdims=True)
        acc_s[...] = alpha * acc_s[...] + jnp.dot(
            p.astype(v.dtype), v, preferred_element_type=jnp.float32)
        m_s[...] = m_new

    # Blocks strictly below the causal diagonal: every entry is valid -> skip
    # the mask work entirely.
    @pl.when(kj < qi)
    def _full_block():
        _attend(apply_mask=False)

    # Diagonal block: apply the causal mask.
    @pl.when(kj == qi)
    def _diag_block():
        _attend(apply_mask=True)

    # kj > qi (strictly above the diagonal): contributes nothing -> no compute,
    # and the clamped index_map means no DMA either.

    @pl.when(kj == nk - 1)
    def _finalize():
        inv_l = pl.reciprocal(l_s[...], approx=True)
        o_ref[...] = (acc_s[...] * inv_l).astype(o_ref.dtype)


def _pick_tile(T):
    # Largest convenient tile that evenly divides T; fall back to whole-T
    # (valid since a block dim equal to the full array dim satisfies the
    # (8,128) rule).  VMEM use at 512 is ~3 MiB, well under the scoped limit.
    for t in (512, 256, 128):
        if T % t == 0:
            return t
    return T


def gpt_attention_block(x, wk, wq, wv, *, interpret=False):
    """x: (B, T, C); wk/wq/wv: (C, H). Returns (B, T, H). Eval-mode (no dropout)."""
    B, T, C = x.shape
    H = wk.shape[1]

    # Fold the (module-matching) C**-0.5 scale into Wq.
    wq_scaled = wq * (C ** -0.5)

    # Pad head dim to a multiple of 128 -> lane-dense stores / full MXU width.
    Hp = max(128, -(-H // 128) * 128)
    if Hp != H:
        pad = ((0, 0), (0, Hp - H))
        wk_p = jnp.pad(wk, pad)
        wq_p = jnp.pad(wq_scaled, pad)
        wv_p = jnp.pad(wv, pad)
    else:
        wk_p, wq_p, wv_p = wk, wq_scaled, wv

    tq = tk = _pick_tile(T)  # equal tiles -> causal block skip is kj > qi
    nq, nk = T // tq, T // tk
    grid = (B, nq, nk)

    x_q_spec = pl.BlockSpec((pl.Squeezed(), tq, C),
                            lambda b, qi, kj: (b, qi, 0))
    # Clamp kj so key blocks above the diagonal re-fetch the previous block
    # (same block index -> no DMA); the kernel skips their compute anyway.
    x_k_spec = pl.BlockSpec((pl.Squeezed(), tk, C),
                            lambda b, qi, kj: (b, jnp.minimum(kj, qi), 0))
    w_spec = pl.BlockSpec((C, Hp), lambda b, qi, kj: (0, 0))
    o_spec = pl.BlockSpec((pl.Squeezed(), tq, Hp),
                          lambda b, qi, kj: (b, qi, 0))

    itemsize = jnp.dtype(x.dtype).itemsize
    cost = pl.CostEstimate(
        flops=int(2 * B * T * C * Hp * (2 + nq) + 2 * B * T * T * Hp),
        transcendentals=int(B * T * T),
        bytes_accessed=int((2 * B * T * C + 3 * C * Hp + B * T * Hp) * itemsize),
    )

    kernel = functools.partial(_flash_attn_kernel, tq=tq, tk=tk)

    out_p = pl.pallas_call(
        kernel,
        out_shape=jax.ShapeDtypeStruct((B, T, Hp), x.dtype),
        grid_spec=pltpu.PrefetchScalarGridSpec(
            num_scalar_prefetch=0,
            grid=grid,
            in_specs=[x_q_spec, x_k_spec, w_spec, w_spec, w_spec],
            out_specs=o_spec,
            scratch_shapes=[
                pltpu.VMEM((tq, Hp), x.dtype),      # cached (scaled) q tile
                pltpu.VMEM((tq, 1), jnp.float32),   # running max m
                pltpu.VMEM((tq, 1), jnp.float32),   # running denom l
                pltpu.VMEM((tq, Hp), jnp.float32),  # f32 output accumulator
            ],
        ),
        compiler_params=pltpu.CompilerParams(
            dimension_semantics=("parallel", "parallel", "arbitrary"),
            vmem_limit_bytes=32 * 1024 * 1024,
        ),
        cost_estimate=cost,
        interpret=interpret,
    )(x, x, wk_p, wq_p, wv_p)

    return out_p[..., :H] if Hp != H else out_p


def _reference(x, wk, wq, wv):
    """Plain-JAX reference mirroring the PyTorch forward (eval mode)."""
    B, T, C = x.shape
    k = x @ wk
    q = x @ wq
    v = x @ wv
    wei = (q @ jnp.swapaxes(k, -2, -1)) * (C ** -0.5)
    tril = jnp.tril(jnp.ones((T, T), dtype=bool))
    wei = jnp.where(tril, wei, -jnp.inf)
    wei = jax.nn.softmax(wei, axis=-1)
    return wei @ v


if __name__ == "__main__":
    # Small shapes consistent with the module: B=2, block_size/T=8,
    # num_embed C=32, head_size H=16.
    B, T, C, H = 2, 8, 32, 16

    key = jax.random.PRNGKey(0)
    kx, kk, kq, kv = jax.random.split(key, 4)

    x = jax.random.normal(kx, (B, T, C), dtype=jnp.float32)

    bound = 1.0 / (C ** 0.5)
    wk = jax.random.uniform(kk, (C, H), jnp.float32, -bound, bound)
    wq = jax.random.uniform(kq, (C, H), jnp.float32, -bound, bound)
    wv = jax.random.uniform(kv, (C, H), jnp.float32, -bound, bound)

    out = jax.block_until_ready(gpt_attention_block(x, wk, wq, wv))
    ref = _reference(x, wk, wq, wv)
    assert out.shape == (B, T, H)
    assert jnp.allclose(out, ref, atol=2e-3, rtol=2e-3), "mismatch vs reference (T=8)"

    # Single-tile flash path (diagonal/masked block only).
    T2 = 256
    x2 = jax.random.normal(jax.random.PRNGKey(1), (B, T2, C), dtype=jnp.float32)
    out2 = jax.block_until_ready(gpt_attention_block(x2, wk, wq, wv))
    ref2 = _reference(x2, wk, wq, wv)
    assert out2.shape == (B, T2, H)
    assert jnp.allclose(out2, ref2, atol=2e-3, rtol=2e-3), "mismatch vs reference (T=256)"

    # Multi-block flash path: exercises unmasked below-diagonal blocks,
    # the diagonal masked block, and the above-diagonal skip (nq = nk = 3).
    T3 = 384
    x3 = jax.random.normal(jax.random.PRNGKey(2), (B, T3, C), dtype=jnp.float32)
    out3 = jax.block_until_ready(gpt_attention_block(x3, wk, wq, wv))
    ref3 = _reference(x3, wk, wq, wv)
    assert out3.shape == (B, T3, H)
    assert jnp.allclose(out3, ref3, atol=2e-3, rtol=2e-3), "mismatch vs reference (T=384)"

    print("KERNEL_OK")
</pallas_src>

<mosaic_0001>
module attributes {stable_mosaic.version = 11 : i64} {
  func.func @_flash_attn_kernel(%arg0: i32, %arg1: i32, %arg2: i32, %arg3: memref<1x8x32xf32, #tpu.memory_space<vmem>>, %arg4: memref<1x8x32xf32, #tpu.memory_space<vmem>>, %arg5: memref<32x128xf32, #tpu.memory_space<vmem>>, %arg6: memref<32x128xf32, #tpu.memory_space<vmem>>, %arg7: memref<32x128xf32, #tpu.memory_space<vmem>>, %arg8: memref<1x8x128xf32, #tpu.memory_space<vmem>>, %arg9: memref<8x128xf32, #tpu.memory_space<vmem>>, %arg10: memref<8x1xf32, #tpu.memory_space<vmem>>, %arg11: memref<8x1xf32, #tpu.memory_space<vmem>>, %arg12: memref<8x128xf32, #tpu.memory_space<vmem>>) attributes {dimension_semantics = [#tpu.dimension_semantics<parallel>, #tpu.dimension_semantics<parallel>, #tpu.dimension_semantics<arbitrary>], iteration_bounds = array<i64: 2, 1, 1>, scalar_prefetch = 0 : i64, scratch_operands = 4 : i64, tpu.core_type = #tpu.core_type<tc>, window_params = [{transform_indices = @transform_0, window_bounds = array<i64: 1, 8, 32>}, {transform_indices = @transform_1, window_bounds = array<i64: 1, 8, 32>}, {pipeline_mode = #tpu.pipeline_mode<synchronous>, transform_indices = @transform_2, window_bounds = array<i64: 32, 128>}, {pipeline_mode = #tpu.pipeline_mode<synchronous>, transform_indices = @transform_3, window_bounds = array<i64: 32, 128>}, {pipeline_mode = #tpu.pipeline_mode<synchronous>, transform_indices = @transform_4, window_bounds = array<i64: 32, 128>}, {transform_indices = @transform_5, window_bounds = array<i64: 1, 8, 128>}]} {
    %c0_i32 = arith.constant 0 : i32
    %0 = arith.cmpi eq, %arg2, %c0_i32 : i32
    %1 = arith.extui %0 : i1 to i32
    %c0_i32_0 = arith.constant 0 : i32
    %2 = arith.cmpi ne, %1, %c0_i32_0 : i32
    scf.if %2 {
      %cst = arith.constant 0xFF800000 : f32
      %12 = vector.broadcast %cst : f32 to vector<8x1xf32>
      %c0 = arith.constant 0 : index
      %c0_5 = arith.constant 0 : index
      %13 = vector.load %arg10[%c0, %c0_5] : memref<8x1xf32, #tpu.memory_space<vmem>>, vector<8x1xf32>
      tpu.vector_store %arg10[%c0, %c0_5], %12 {strides = array<i32>} : memref<8x1xf32, #tpu.memory_space<vmem>>, vector<8x1xf32>,
      %cst_6 = arith.constant 0.000000e+00 : f32
      %14 = vector.broadcast %cst_6 : f32 to vector<8x1xf32>
      %c0_7 = arith.constant 0 : index
      %c0_8 = arith.constant 0 : index
      %15 = vector.load %arg11[%c0_7, %c0_8] : memref<8x1xf32, #tpu.memory_space<vmem>>, vector<8x1xf32>
      tpu.vector_store %arg11[%c0_7, %c0_8], %14 {strides = array<i32>} : memref<8x1xf32, #tpu.memory_space<vmem>>, vector<8x1xf32>,
      %cst_9 = arith.constant 0.000000e+00 : f32
      %16 = vector.broadcast %cst_9 : f32 to vector<8x128xf32>
      %c0_10 = arith.constant 0 : index
      %c0_11 = arith.constant 0 : index
      %17 = vector.load %arg12[%c0_10, %c0_11] : memref<8x128xf32, #tpu.memory_space<vmem>>, vector<8x128xf32>
      tpu.vector_store %arg12[%c0_10, %c0_11], %16 {strides = array<i32>} : memref<8x128xf32, #tpu.memory_space<vmem>>, vector<8x128xf32>,
      %c0_12 = arith.constant 0 : index
      %c0_13 = arith.constant 0 : index
      %c0_14 = arith.constant 0 : index
      %18 = vector.load %arg3[%c0_12, %c0_13, %c0_14] : memref<1x8x32xf32, #tpu.memory_space<vmem>>, vector<1x8x32xf32>
      %19 = vector.shape_cast %18 : vector<1x8x32xf32> to vector<8x32xf32>
      %c0_15 = arith.constant 0 : index
      %c0_16 = arith.constant 0 : index
      %20 = vector.load %arg6[%c0_15, %c0_16] : memref<32x128xf32, #tpu.memory_space<vmem>>, vector<32x128xf32>
      %cst_17 = arith.constant dense<0.000000e+00> : vector<8x128xf32>
      %21 = tpu.matmul %19, %20, %cst_17 {dimension_numbers = #tpu.dot_dimension_numbers<[1], [0], [0], [1], [0, 0, 1, 1], [], []>} : vector<8x32xf32>, vector<32x128xf32>, vector<8x128xf32> -> vector<8x128xf32>
      %c0_18 = arith.constant 0 : index
      %c0_19 = arith.constant 0 : index
      %22 = vector.load %arg9[%c0_18, %c0_19] : memref<8x128xf32, #tpu.memory_space<vmem>>, vector<8x128xf32>
      tpu.vector_store %arg9[%c0_18, %c0_19], %21 {strides = array<i32>} : memref<8x128xf32, #tpu.memory_space<vmem>>, vector<8x128xf32>,
    } else {
    }
    %3 = arith.cmpi slt, %arg2, %arg1 : i32
    %4 = arith.extui %3 : i1 to i32
    %c0_i32_1 = arith.constant 0 : i32
    %5 = arith.cmpi ne, %4, %c0_i32_1 : i32
    scf.if %5 {
      %c0 = arith.constant 0 : index
      %c0_5 = arith.constant 0 : index
      %c0_6 = arith.constant 0 : index
      %12 = vector.load %arg4[%c0, %c0_5, %c0_6] : memref<1x8x32xf32, #tpu.memory_space<vmem>>, vector<1x8x32xf32>
      %13 = vector.shape_cast %12 : vector<1x8x32xf32> to vector<8x32xf32>
      %c0_7 = arith.constant 0 : index
      %c0_8 = arith.constant 0 : index
      %14 = vector.load %arg5[%c0_7, %c0_8] : memref<32x128xf32, #tpu.memory_space<vmem>>, vector<32x128xf32>
      %cst = arith.constant dense<0.000000e+00> : vector<8x128xf32>
      %15 = tpu.matmul %13, %14, %cst {dimension_numbers = #tpu.dot_dimension_numbers<[1], [0], [0], [1], [0, 0, 1, 1], [], []>} : vector<8x32xf32>, vector<32x128xf32>, vector<8x128xf32> -> vector<8x128xf32>
      %c0_9 = arith.constant 0 : index
      %c0_10 = arith.constant 0 : index
      %16 = vector.load %arg7[%c0_9, %c0_10] : memref<32x128xf32, #tpu.memory_space<vmem>>, vector<32x128xf32>
      %cst_11 = arith.constant dense<0.000000e+00> : vector<8x128xf32>
      %17 = tpu.matmul %13, %16, %cst_11 {dimension_numbers = #tpu.dot_dimension_numbers<[1], [0], [0], [1], [0, 0, 1, 1], [], []>} : vector<8x32xf32>, vector<32x128xf32>, vector<8x128xf32> -> vector<8x128xf32>
      %c0_12 = arith.constant 0 : index
      %c0_13 = arith.constant 0 : index
      %18 = vector.load %arg9[%c0_12, %c0_13] : memref<8x128xf32, #tpu.memory_space<vmem>>, vector<8x128xf32>
      %cst_14 = arith.constant dense<0.000000e+00> : vector<8x8xf32>
      %19 = tpu.matmul %18, %15, %cst_14 {dimension_numbers = #tpu.dot_dimension_numbers<[1], [1], [0], [0], [0, 0, 1, 0], [], []>} : vector<8x128xf32>, vector<8x128xf32>, vector<8x8xf32> -> vector<8x8xf32>
      %c0_15 = arith.constant 0 : index
      %c0_16 = arith.constant 0 : index
      %20 = vector.load %arg10[%c0_15, %c0_16] : memref<8x1xf32, #tpu.memory_space<vmem>>, vector<8x1xf32>
      %cst_17 = arith.constant dense<0xFF800000> : vector<8xf32>
      %21 = vector.multi_reduction <maximumf>, %19, %cst_17 [1] : vector<8x8xf32> to vector<8xf32>
      %22 = vector.shape_cast %21 : vector<8xf32> to vector<8x1xf32>
      %23 = arith.maximumf %20, %22 : vector<8x1xf32>
      %24 = arith.subf %20, %23 : vector<8x1xf32>
      %25 = math.exp %24 : vector<8x1xf32>
      %26 = vector.broadcast %23 : vector<8x1xf32> to vector<8x8xf32>
      %27 = arith.subf %19, %26 : vector<8x8xf32>
      %28 = math.exp %27 : vector<8x8xf32>
      %c0_18 = arith.constant 0 : index
      %c0_19 = arith.constant 0 : index
      %29 = vector.load %arg11[%c0_18, %c0_19] : memref<8x1xf32, #tpu.memory_space<vmem>>, vector<8x1xf32>
      %30 = arith.mulf %25, %29 : vector<8x1xf32>
      %cst_20 = arith.constant dense<0.000000e+00> : vector<8xf32>
      %31 = vector.multi_reduction <add>, %28, %cst_20 [1] : vector<8x8xf32> to vector<8xf32>
      %32 = vector.shape_cast %31 : vector<8xf32> to vector<8x1xf32>
      %33 = arith.addf %30, %32 : vector<8x1xf32>
      %c0_21 = arith.constant 0 : index
      %c0_22 = arith.constant 0 : index
      %34 = vector.load %arg11[%c0_21, %c0_22] : memref<8x1xf32, #tpu.memory_space<vmem>>, vector<8x1xf32>
      tpu.vector_store %arg11[%c0_21, %c0_22], %33 {strides = array<i32>} : memref<8x1xf32, #tpu.memory_space<vmem>>, vector<8x1xf32>,
      %c0_23 = arith.constant 0 : index
      %c0_24 = arith.constant 0 : index
      %35 = vector.load %arg12[%c0_23, %c0_24] : memref<8x128xf32, #tpu.memory_space<vmem>>, vector<8x128xf32>
      %36 = vector.broadcast %25 : vector<8x1xf32> to vector<8x128xf32>
      %37 = arith.mulf %36, %35 : vector<8x128xf32>
      %cst_25 = arith.constant dense<0.000000e+00> : vector<8x128xf32>
      %38 = tpu.matmul %28, %17, %cst_25 {dimension_numbers = #tpu.dot_dimension_numbers<[1], [0], [0], [1], [0, 0, 1, 1], [], []>} : vector<8x8xf32>, vector<8x128xf32>, vector<8x128xf32> -> vector<8x128xf32>
      %39 = arith.addf %37, %38 : vector<8x128xf32>
      %c0_26 = arith.constant 0 : index
      %c0_27 = arith.constant 0 : index
      %40 = vector.load %arg12[%c0_26, %c0_27] : memref<8x128xf32, #tpu.memory_space<vmem>>, vector<8x128xf32>
      tpu.vector_store %arg12[%c0_26, %c0_27], %39 {strides = array<i32>} : memref<8x128xf32, #tpu.memory_space<vmem>>, vector<8x128xf32>,
      %c0_28 = arith.constant 0 : index
      %c0_29 = arith.constant 0 : index
      %41 = vector.load %arg10[%c0_28, %c0_29] : memref<8x1xf32, #tpu.memory_space<vmem>>, vector<8x1xf32>
      tpu.vector_store %arg10[%c0_28, %c0_29], %23 {strides = array<i32>} : memref<8x1xf32, #tpu.memory_space<vmem>>, vector<8x1xf32>,
    } else {
    }
    %6 = arith.cmpi eq, %arg2, %arg1 : i32
    %7 = arith.extui %6 : i1 to i32
    %c0_i32_2 = arith.constant 0 : i32
    %8 = arith.cmpi ne, %7, %c0_i32_2 : i32
    scf.if %8 {
      %c0 = arith.constant 0 : index
      %c0_5 = arith.constant 0 : index
      %c0_6 = arith.constant 0 : index
      %12 = vector.load %arg4[%c0, %c0_5, %c0_6] : memref<1x8x32xf32, #tpu.memory_space<vmem>>, vector<1x8x32xf32>
      %13 = vector.shape_cast %12 : vector<1x8x32xf32> to vector<8x32xf32>
      %c0_7 = arith.constant 0 : index
      %c0_8 = arith.constant 0 : index
      %14 = vector.load %arg5[%c0_7, %c0_8] : memref<32x128xf32, #tpu.memory_space<vmem>>, vector<32x128xf32>
      %cst = arith.constant dense<0.000000e+00> : vector<8x128xf32>
      %15 = tpu.matmul %13, %14, %cst {dimension_numbers = #tpu.dot_dimension_numbers<[1], [0], [0], [1], [0, 0, 1, 1], [], []>} : vector<8x32xf32>, vector<32x128xf32>, vector<8x128xf32> -> vector<8x128xf32>
      %c0_9 = arith.constant 0 : index
      %c0_10 = arith.constant 0 : index
      %16 = vector.load %arg7[%c0_9, %c0_10] : memref<32x128xf32, #tpu.memory_space<vmem>>, vector<32x128xf32>
      %cst_11 = arith.constant dense<0.000000e+00> : vector<8x128xf32>
      %17 = tpu.matmul %13, %16, %cst_11 {dimension_numbers = #tpu.dot_dimension_numbers<[1], [0], [0], [1], [0, 0, 1, 1], [], []>} : vector<8x32xf32>, vector<32x128xf32>, vector<8x128xf32> -> vector<8x128xf32>
      %c0_12 = arith.constant 0 : index
      %c0_13 = arith.constant 0 : index
      %18 = vector.load %arg9[%c0_12, %c0_13] : memref<8x128xf32, #tpu.memory_space<vmem>>, vector<8x128xf32>
      %cst_14 = arith.constant dense<0.000000e+00> : vector<8x8xf32>
      %19 = tpu.matmul %18, %15, %cst_14 {dimension_numbers = #tpu.dot_dimension_numbers<[1], [1], [0], [0], [0, 0, 1, 0], [], []>} : vector<8x128xf32>, vector<8x128xf32>, vector<8x8xf32> -> vector<8x8xf32>
      %c8_i32 = arith.constant 8 : i32
      %20 = arith.muli %arg1, %c8_i32 : i32
      %21 = tpu.iota {dimensions = array<i32: 0>} : vector<8x8xi32>
      %22 = vector.broadcast %20 : i32 to vector<8x8xi32>
      %23 = arith.addi %22, %21 : vector<8x8xi32>
      %c8_i32_15 = arith.constant 8 : i32
      %24 = arith.muli %arg2, %c8_i32_15 : i32
      %25 = tpu.iota {dimensions = array<i32: 1>} : vector<8x8xi32>
      %26 = vector.broadcast %24 : i32 to vector<8x8xi32>
      %27 = arith.addi %26, %25 : vector<8x8xi32>
      %28 = arith.cmpi sle, %27, %23 : vector<8x8xi32>
      %cst_16 = arith.constant 0xFF800000 : f32
      %29 = vector.broadcast %cst_16 : f32 to vector<8x8xf32>
      %30 = arith.select %28, %19, %29 : vector<8x8xi1>, vector<8x8xf32>
      %c0_17 = arith.constant 0 : index
      %c0_18 = arith.constant 0 : index
      %31 = vector.load %arg10[%c0_17, %c0_18] : memref<8x1xf32, #tpu.memory_space<vmem>>, vector<8x1xf32>
      %cst_19 = arith.constant dense<0xFF800000> : vector<8xf32>
      %32 = vector.multi_reduction <maximumf>, %30, %cst_19 [1] : vector<8x8xf32> to vector<8xf32>
      %33 = vector.shape_cast %32 : vector<8xf32> to vector<8x1xf32>
      %34 = arith.maximumf %31, %33 : vector<8x1xf32>
      %35 = arith.subf %31, %34 : vector<8x1xf32>
      %36 = math.exp %35 : vector<8x1xf32>
      %37 = vector.broadcast %34 : vector<8x1xf32> to vector<8x8xf32>
      %38 = arith.subf %30, %37 : vector<8x8xf32>
      %39 = math.exp %38 : vector<8x8xf32>
      %c0_20 = arith.constant 0 : index
      %c0_21 = arith.constant 0 : index
      %40 = vector.load %arg11[%c0_20, %c0_21] : memref<8x1xf32, #tpu.memory_space<vmem>>, vector<8x1xf32>
      %41 = arith.mulf %36, %40 : vector<8x1xf32>
      %cst_22 = arith.constant dense<0.000000e+00> : vector<8xf32>
      %42 = vector.multi_reduction <add>, %39, %cst_22 [1] : vector<8x8xf32> to vector<8xf32>
      %43 = vector.shape_cast %42 : vector<8xf32> to vector<8x1xf32>
      %44 = arith.addf %41, %43 : vector<8x1xf32>
      %c0_23 = arith.constant 0 : index
      %c0_24 = arith.constant 0 : index
      %45 = vector.load %arg11[%c0_23, %c0_24] : memref<8x1xf32, #tpu.memory_space<vmem>>, vector<8x1xf32>
      tpu.vector_store %arg11[%c0_23, %c0_24], %44 {strides = array<i32>} : memref<8x1xf32, #tpu.memory_space<vmem>>, vector<8x1xf32>,
      %c0_25 = arith.constant 0 : index
      %c0_26 = arith.constant 0 : index
      %46 = vector.load %arg12[%c0_25, %c0_26] : memref<8x128xf32, #tpu.memory_space<vmem>>, vector<8x128xf32>
      %47 = vector.broadcast %36 : vector<8x1xf32> to vector<8x128xf32>
      %48 = arith.mulf %47, %46 : vector<8x128xf32>
      %cst_27 = arith.constant dense<0.000000e+00> : vector<8x128xf32>
      %49 = tpu.matmul %39, %17, %cst_27 {dimension_numbers = #tpu.dot_dimension_numbers<[1], [0], [0], [1], [0, 0, 1, 1], [], []>} : vector<8x8xf32>, vector<8x128xf32>, vector<8x128xf32> -> vector<8x128xf32>
      %50 = arith.addf %48, %49 : vector<8x128xf32>
      %c0_28 = arith.constant 0 : index
      %c0_29 = arith.constant 0 : index
      %51 = vector.load %arg12[%c0_28, %c0_29] : memref<8x128xf32, #tpu.memory_space<vmem>>, vector<8x128xf32>
      tpu.vector_store %arg12[%c0_28, %c0_29], %50 {strides = array<i32>} : memref<8x128xf32, #tpu.memory_space<vmem>>, vector<8x128xf32>,
      %c0_30 = arith.constant 0 : index
      %c0_31 = arith.constant 0 : index
      %52 = vector.load %arg10[%c0_30, %c0_31] : memref<8x1xf32, #tpu.memory_space<vmem>>, vector<8x1xf32>
      tpu.vector_store %arg10[%c0_30, %c0_31], %34 {strides = array<i32>} : memref<8x1xf32, #tpu.memory_space<vmem>>, vector<8x1xf32>,
    } else {
    }
    %c0_i32_3 = arith.constant 0 : i32
    %9 = arith.cmpi eq, %arg2, %c0_i32_3 : i32
    %10 = arith.extui %9 : i1 to i32
    %c0_i32_4 = arith.constant 0 : i32
    %11 = arith.cmpi ne, %10, %c0_i32_4 : i32
    scf.if %11 {
      %c0 = arith.constant 0 : index
      %c0_5 = arith.constant 0 : index
      %12 = vector.load %arg11[%c0, %c0_5] : memref<8x1xf32, #tpu.memory_space<vmem>>, vector<8x1xf32>
      %13 = tpu.reciprocal %12 {approx = true} : vector<8x1xf32> -> vector<8x1xf32>
      %c0_6 = arith.constant 0 : index
      %c0_7 = arith.constant 0 : index
      %14 = vector.load %arg12[%c0_6, %c0_7] : memref<8x128xf32, #tpu.memory_space<vmem>>, vector<8x128xf32>
      %15 = vector.broadcast %13 : vector<8x1xf32> to vector<8x128xf32>
      %16 = arith.mulf %14, %15 : vector<8x128xf32>
      %c0_8 = arith.constant 0 : index
      %c0_9 = arith.constant 0 : index
      %c0_10 = arith.constant 0 : index
      %17 = vector.load %arg8[%c0_8, %c0_9, %c0_10] : memref<1x8x128xf32, #tpu.memory_space<vmem>>, vector<1x8x128xf32>
      %18 = vector.shape_cast %17 : vector<1x8x128xf32> to vector<8x128xf32>
      %19 = vector.shape_cast %16 : vector<8x128xf32> to vector<1x8x128xf32>
      tpu.vector_store %arg8[%c0_8, %c0_9, %c0_10], %19 {strides = array<i32>} : memref<1x8x128xf32, #tpu.memory_space<vmem>>, vector<1x8x128xf32>,
    } else {
    }
    return
  }
  func.func @transform_0(%arg0: i32, %arg1: i32, %arg2: i32) -> (i32, i32, i32) {
    %c0_i32 = arith.constant 0 : i32
    %c0_i32_0 = arith.constant 0 : i32
    return %arg0, %arg1, %c0_i32 : i32, i32, i32
  }
  func.func @transform_1(%arg0: i32, %arg1: i32, %arg2: i32) -> (i32, i32, i32) {
    %0 = arith.minsi %arg2, %arg1 : i32
    %c0_i32 = arith.constant 0 : i32
    %c0_i32_0 = arith.constant 0 : i32
    return %arg0, %0, %c0_i32 : i32, i32, i32
  }
  func.func @transform_2(%arg0: i32, %arg1: i32, %arg2: i32) -> (i32, i32) {
    %c0_i32 = arith.constant 0 : i32
    %c0_i32_0 = arith.constant 0 : i32
    %c0_i32_1 = arith.constant 0 : i32
    return %c0_i32, %c0_i32_0 : i32, i32
  }
  func.func @transform_3(%arg0: i32, %arg1: i32, %arg2: i32) -> (i32, i32) {
    %c0_i32 = arith.constant 0 : i32
    %c0_i32_0 = arith.constant 0 : i32
    %c0_i32_1 = arith.constant 0 : i32
    return %c0_i32, %c0_i32_0 : i32, i32
  }
  func.func @transform_4(%arg0: i32, %arg1: i32, %arg2: i32) -> (i32, i32) {
    %c0_i32 = arith.constant 0 : i32
    %c0_i32_0 = arith.constant 0 : i32
    %c0_i32_1 = arith.constant 0 : i32
    return %c0_i32, %c0_i32_0 : i32, i32
  }
  func.func @transform_5(%arg0: i32, %arg1: i32, %arg2: i32) -> (i32, i32, i32) {
    %c0_i32 = arith.constant 0 : i32
    %c0_i32_0 = arith.constant 0 : i32
    return %arg0, %arg1, %c0_i32 : i32, i32, i32
  }
}

</mosaic_0001>

<bundles_post_ra>
// kernel: tpu_custom_call.1
= control target key start
LH: loop header
LB: loop body
LE: loop exit
PB: predicated region body
PF: predicated region fallthrough
CT: control target
= control target key end

     0   :  { %s1464_s0 = inlined_call_operand.hbm [shape: f32[2,8,32], index: 0, kind: input, shape index: {}]   ;;  %s1465_s1 = inlined_call_operand.hbm [shape: f32[2,8,32], index: 1, kind: input, shape index: {}]   ;;  %s1466_s2 = inlined_call_operand.hbm [shape: f32[32,128], index: 2, kind: input, shape index: {}]   ;;  %s1467_s3 = inlined_call_operand.hbm [shape: f32[32,128], index: 3, kind: input, shape index: {}]   ;;  %s1468_s4 = inlined_call_operand.hbm [shape: f32[32,128], index: 4, kind: input, shape index: {}]   ;;  %s1469_s5 = inlined_call_operand.hbm [shape: f32[2,8,128], index: 5, kind: output, shape index: {}]  }
   0x1   :  { %1472 = sst [smem:[#allocation24_spill]] %s1466_s2 }
   0x2   :  { %1473 = sst [smem:[#allocation25_spill]] %s1467_s3 }
   0x3   :  { %1474 = sst [smem:[#allocation26_spill]] %s1468_s4 }
   0x4   :  { %10 = vsyncpa [#allocation7], 0 }
   0x5   :  { %12 = vsyncpa [#allocation7 + $0x1], 0 }
   0x6   :  { %13 = vsyncpa [#allocation10], 0 }
   0x7   :  { %15 = vsyncpa [#allocation10 + $0x1], 0 }
   0x8   :  { %16 = vsyncpa [#allocation13], 0 }
   0x9   :  { %17 = vsyncpa [#allocation8], 0 }
   0xa   :  { %19 = vsyncpa [#allocation8 + $0x1], 0  ;;  %s1277_s18 = smov 0   ;;  %s1279_s19 = smov 0  }
   0xb   :  { %s1281_s20 = smov 0   ;;  %s1283_s21 = smov 0  }
   0xc   :  { %s1285_s22 = smov 0   ;;  %s1287_s23 = smov 0  }
   0xd LB: > { %1475 = sst [smem:[#allocation21_spill]] %s1233_s22  ;;  %s1308_s24 = sadd.s32 4294967295, %s1237_s23   ;;  %s1237_s23 = sphi %s1287_s23, %s25_s23   ;;  %s1233_s22 = sphi %s1285_s22, %s1489_s22   ;;  %s1229_s21 = sphi %s1283_s21, %s1488_s21   ;;  %s1225_s20 = sphi %s1281_s20, %s1492_s20   ;;  %s1221_s19 = sphi %s1279_s19, %s1491_s19   ;;  %s1217_s18 = sphi %s1277_s18, %s1490_s18  }
   0xe   : > { %p854_p0 = scmp.ge.s32.totalorder %s1237_s23, 1  ;;  %p67_p1 = scmp.eq.s32.totalorder %s1308_s24, 0 }
   0xf   : > { %p200_p2 = scmp.lt.s32.totalorder %s1237_s23, 3  ;;  %s1476_s2 = sld [smem:[#allocation24_spill]] }
  0x10   : > { %s1239_s29 = smov [#allocation11]   ;;  %p858_p6 = scmp.ge.s32.totalorder %s1237_s23, 2 }
  0x11   : > { %p1316_p3 = pnand %p854_p0, %p200_p2  ;;  %s213_s30 = sshll.u32 %s1239_s29, 4  ;;  %s214_s30 = int_to_ptr.vmem [resolvable:$true] %s213_s30 }
  0x12   : > { %s1479_s3 = sld [smem:[#allocation25_spill]]  ;;  %s1240_s10 = smov 128  }
  0x13   : > { %p899_p4 = pneg %p1316_p3  ;;  %s1241_s11 = smov 8  }
  0x14   : > { %s1242_s12 = smov [#allocation12]   ;;  %s1480_s4 = sld [smem:[#allocation26_spill]] }
  0x15   : > { %s211_s27 = sshll.u32 %s1476_s2, 4  ;;  %p1324_p5 = pnand %p899_p4, %p67_p1  ;;  %s212_s27 = int_to_ptr.hbm [resolvable:$true] %s211_s27 }
  0x16   : > { %s227_s13 = sshll.u32 %s1242_s12, 4  ;;  %s1243_s17 = smov [#allocation14]   ;;  %s228_s13 = int_to_ptr.vmem [resolvable:$true] %s227_s13 }
  0x17   : > { %902 = dma.hbm_to_vmem [thread:$0]  (!%p1324_p5), %s212_s27, 512, %s214_s30, [#allocation10], %s1240_s10, %s1240_s10, %s1241_s11  }
  0x18   : > { %s225_s9 = sshll.u32 %s1479_s3, 4  ;;  %s241_s25 = sshll.u32 %s1243_s17, 4  ;;  %s226_s9 = int_to_ptr.hbm [resolvable:$true] %s225_s9  ;;  %s242_s25 = int_to_ptr.vmem [resolvable:$true] %s241_s25 }
  0x19   : > { %905 = dma.hbm_to_vmem [thread:$0]  (!%p1324_p5), %s226_s9, 512, %s228_s13, [#allocation13], %s1240_s10, %s1240_s10, %s1241_s11  }
  0x1a   : > { %s239_s16 = sshll.u32 %s1480_s4, 4  ;;  %s853_s26 = sadd.s32 4294967294, %s1237_s23   ;;  %s240_s16 = int_to_ptr.hbm [resolvable:$true] %s239_s16 }
  0x1b   : > { %908 = dma.hbm_to_vmem [thread:$0]  (!%p1324_p5), %s240_s16, 512, %s242_s25, [#allocation13], %s1240_s10, %s1240_s10, %s1241_s11  }
  0x1c   : > { %s44_s27 = sadd.s32 1, %s1233_s22  ;;  %s53_s29 = sadd.s32 1, %s1225_s20 }
  0x1d   : > { %p46_p7 = scmp.ge.s32.totalorder %s44_s27, 2  ;;  %p60_p8 = scmp.ne.s32.totalorder %s1225_s20, %s1221_s19 }
  0x1e   : > { %p61_p9 = scmp.eq.s32.totalorder %s1237_s23, 0  ;;  %p66_p10 = scmp.ne.s32.totalorder %s1221_s19, %s1217_s18 }
  0x1f   : > { %s1494_s27 = smov (%p46_p7, %s44_s27), 0  ;;  %p187_p13 = scmp.eq.s32.totalorder %s1308_s24, 1 }
  0x20   : > { %1481 = sst [smem:[#allocation22_spill]] %s1494_s27  ;;  %p1351_p11 = por %p61_p9, %p60_p8 }
  0x21   : > { %p1357_p12 = por %p67_p1, %p66_p10  ;;  %s48_s7 = ssub.s32 %s1233_s22, %s1494_s27 }
  0x22   : > { %p51_p0 = scmp.eq.s32.totalorder %s48_s7, 0  ;;  %p193_p2 = scmp.eq.s32.totalorder %s853_s26, 1 }
  0x23   : > { %p1364_p4 = por %p187_p13, %p60_p8  ;;  %p923_p5 = scmp.lt.s32.totalorder %s1237_s23, 2 }
  0x24   : > { %s1370_s9 = scalar_select %p51_p0, %s1225_s20, %s53_s29  }
  0x25   : > { %p1372_p7 = por %p193_p2, %p66_p10  ;;  %s255_s11 = sand.u32 1, %s1225_s20  }
  0x26   : > { %1485 = sst [smem:[#allocation23_spill]] %s1370_s9  ;;  %s859_s12 = sshll.u32 %s255_s11, 3 }
  0x27   : > { %s860_s13 = sshll.u32 %s1233_s22, 3  ;;  %s259_s17 = scalar_lea.vmem [#allocation6], %s859_s12 }
  0x28   : > { %s264_s16 = scalar_lea.hbm %s1464_s0, %s860_s13  ;;  %s268_s25 = sshll.u32 %s259_s17, 4  ;;  %s269_s25 = int_to_ptr.vmem [resolvable:$true] %s268_s25 }
  0x29   : > { %s266_s26 = sshll.u32 %s264_s16, 4  ;;  %p910_p8 = pnand %p923_p5, %p1351_p11  ;;  %s267_s26 = int_to_ptr.hbm [resolvable:$true] %s266_s26 }
  0x2a   : > { %s286_s2 = scalar_lea.hbm %s1465_s1, %s860_s13  ;;  %s275_s3 = sand.u32 1, %s1237_s23  }
  0x2b   : > { %s256_s4 = scalar_lea.sflag [#allocation7], %s255_s11  ;;  %s288_s27 = sshll.u32 %s286_s2, 4  ;;  %s289_s27 = int_to_ptr.hbm [resolvable:$true] %s288_s27 }
  0x2c   : > { %912 = dma.hbm_to_vmem [thread:$0]  (!%p910_p8), %s267_s26, 128, %s269_s25, %s256_s4  }
  0x2d   : > { %s279_s22 = scalar_lea.vmem [#allocation9], %s859_s12  ;;  %s276_s14 = scalar_lea.sflag [#allocation10], %s275_s3 }
  0x2e   : > { %s290_s9 = sshll.u32 %s279_s22, 4  ;;  %299 = sbr.rel (%p1316_p3) target bundleno = 804 (0x324), region = 40  ;;  %s291_s9 = int_to_ptr.vmem [resolvable:$true] %s290_s9 }
  0x2f   : > { %915 = dma.hbm_to_vmem [thread:$0]  (!%p910_p8), %s289_s27, 128, %s291_s9, %s276_s14  }
  0x30   : > { %s1390_s30 = sand.u32 (!%p1316_p3), 1, %s1221_s19  }
  0x31   : > { %s1393_s13 = sshll.u32 (!%p1316_p3), %s1390_s30, 3  ;;  %s302_s4 = scalar_lea.sflag (!%p1316_p3), [#allocation7], %s1390_s30 }
  0x32   : > { %s305_s2 = scalar_lea.vmem (!%p1316_p3), [#allocation6], %s1393_s13 }
  0x33   : > { %1196 = dma.done.wait (%p1357_p12), %s302_s4, 128  }
  0x34   : > { %1198 = vsyncadd (%p1357_p12), %s302_s4, 4294967168  ;;  %s311_s3 = sand.u32 1, %s1308_s24   ;;  %s315_s28 = scalar_lea.vmem [#allocation9], %s1393_s13 }
  0x35   : > { %s312_s22 = scalar_lea.sflag [#allocation10], %s311_s3 }
  0x36   : > { %1200 = dma.done.wait (%p1357_p12), %s312_s22, 128  }
  0x37   : > { %1202 = vsyncadd (%p1357_p12), %s312_s22, 4294967168 }
  0x38   : > { %1204 = dma.done.wait (%p67_p1), [#allocation10], 512  }
  0x39   : > { %1206 = vsyncadd (%p67_p1), [#allocation10], 4294966784 }
  0x3a   : > { %1208 = dma.done.wait (%p67_p1), [#allocation13], 1024  }
  0x3b   : > { %1210 = vsyncadd (%p67_p1), [#allocation13], 4294966272  ;;  %v547_v0 = vld [vmem:[#allocation11 + $0x18] sm:$0xff]  ;;  %v546_v1 = vld [vmem:[#allocation11 + $0x10] sm:$0xff]  ;;  %vm378_vm0 = vcmask 261120   ;;  %vm369_vm1 = vcmask 7168   ;;  %v618_v17 = vlaneseq }
  0x3c   : > { %v377_v2 = vld [vmem:[#allocation12 + $0x18] sm:$0xff]  ;;  %564 = vmatpush.msra.mxu1 %v547_v0  ;;  %v376_v3 = vld [vmem:[#allocation12 + $0x10] sm:$0xff]  ;;  %v545_v4 = vld [vmem:[#allocation11 + $0x8] sm:$0xff]  ;;  %v1244_v14 = vmov -inf   ;;  %vm630_vm3 = vcmask 64512   ;;  %v1245_v23 = vmov 0  }
  0x3d   : > { %394 = vmatpush.msra.mxu0 %v377_v2  ;;  %v375_v5 = vld [vmem:[#allocation12 + $0x8] sm:$0xff]  ;;  %v544_v6 = vld [vmem:[#allocation11] sm:$0xff]  ;;  %v543_v8 = vld [vmem:[%s315_s28] sm:$0xff]  ;;  %370 = vst.msk [vmem:[#allocation3] sm:$0xff] %vm369_vm1, %v1244_v14  ;;  %v619_v18 = vshrl.u32 %v618_v17, 7  ;;  %v624_v19 = vand.u32 127, %v618_v17  ;;  %984 = vset.pattern.permute.xlu0 %v1245_v23 }
  0x3e   : > { %565 = vmatpush.msra.mxu1 %v546_v1  ;;  %v374_v7 = vld [vmem:[#allocation12] sm:$0xff]  ;;  %v575_v12 = vld [vmem:[#allocation14 + $0x18] sm:$0xff]  ;;  %v574_v13 = vld [vmem:[#allocation14 + $0x10] sm:$0xff]  ;;  %985 = vset.pattern.permute.xlu1 %v1245_v23  ;;  %v1246_v24 = vmov 0.0   ;;  %s878_s24 = sshll.u32 %s1229_s21, 3  ;;  %s362_s11 = scalar_lea.vmem [#allocation15], %s1393_s13 }
  0x3f   : > { %395 = vmatpush.msra.mxu0 %v376_v3  ;;  %v373_v9 = vld [vmem:[%s305_s2] sm:$0xff]  ;;  %588 = vmatpush.msra.mxu2 %v575_v12  ;;  %vm627_vm2 = vcmp.le.s32.totalorder %v624_v19, %v619_v18  ;;  %371 = vst.msk [vmem:[#allocation4] sm:$0xff] %vm369_vm1, %v1246_v24  ;;  %s712_s9 = scalar_lea.hbm %s1469_s5, %s878_s24  ;;  %s714_s12 = sshll.u32 %s362_s11, 4  ;;  %s715_s12 = int_to_ptr.vmem [resolvable:$true] %s714_s12 }
  0x40   : > { %566 = vmatpush.msra.mxu1 %v545_v4  ;;  %v573_v15 = vld [vmem:[#allocation14 + $0x8] sm:$0xff]  ;;  %v572_v16 = vld [vmem:[#allocation14] sm:$0xff]  ;;  %986 = vset.pattern.permute.xlu2 %v1245_v23  ;;  %s716_s15 = sshll.u32 %s712_s9, 4  ;;  %s701_s16 = scalar_lea.sflag [#allocation8], %s1390_s30  ;;  %s717_s15 = int_to_ptr.hbm [resolvable:$true] %s716_s15 }
  0x41   : > { %396 = vmatpush.msra.mxu0 %v375_v5  ;;  %589 = vmatpush.msra.mxu2 %v574_v13  ;;  %s1157_s17 = sshra.s32 %s717_s15, 4  ;;  %s1163_s29 = scalar_lea.hbm %s1469_s5, 16  ;;  %s1158_s17 = int_to_ptr.hbm [resolvable:$true] %s1157_s17 }
  0x42   : > { %567 = vmatpush.msra.mxu1 %v544_v6  ;;  %s1159_s21 = scalar_lea.hbm %s1158_s17, 8  ;;  %p1164_p10 = scmp.lt.s32.totalorder %s1158_s17, %s1469_s5 }
  0x43   : > { %397 = vmatpush.msra.mxu0 %v374_v7  ;;  %874 = vmatmul.msk.f32.vlgmr.msra.gmra.mxu1 %vm378_vm0, %v543_v8  ;;  %p1160_p1 = scmp.ne.s32.totalorder %s1158_s17, %s1159_s21  ;;  %p1165_p11 = scmp.lt.s32.totalorder %s1163_s29, %s1159_s21 }
  0x44   : > { %870 = vmatmul.msk.f32.vlgmr.msra.gmra.mxu0 %vm378_vm0, %v373_v9  ;;  %590 = vmatpush.msra.mxu2 %v573_v15  ;;  %v629_v25 = vld [vmem:[#allocation3] sm:$0xff] }
  0x45   : > { %p1161_p3 = pnand %p1160_p1, %p1364_p4  ;;  %p1166_p12 = por %p1165_p11, %p1164_p10 }
  0x46   : > { %591 = vmatpush.msra.mxu2 %v572_v16  ;;  %v646_v37 = vld [vmem:[#allocation4] sm:$0xff] }
  0x47   : > { %875 = vmatmul.msk.f32.vlgmr.msra.gmra.mxu2 %vm378_vm0, %v543_v8  ;;  %p1162_p9 = pneg %p1161_p3 }
  0x49   : > { %p1167_p13 = pnand %p1166_p12, %p1162_p9 }
  0xc0   : > { %v569_v10 = vpop.f32.mrf.mxu1 }
  0xc1   : > { %612 = vmatpush.xpose.msra.mxu3 %v569_v10  ;;  %v399_v11 = vpop.f32.mrf.mxu0 }
  0xc4   : > { %613 = vmatmul.f32.vlgmr.msra.gmra.mxu3 %v399_v11 }
  0xca   : > { %v593_v29 = vpop.f32.mrf.mxu2 }
  0xcb   : > { %679 = vmatpush.msrb.mxu3 %v593_v29 }
 0x147   : > { %v614_v20 = vpop.f32.mrf.mxu3 }
 0x148   : > { %v628_v21 = vsel %vm627_vm2, %v614_v20, -inf }
 0x149   : > { %v631_v22 = vsel %vm630_vm3, %v628_v21, -inf }
 0x14a   : > { %632 = vmax.xlane.f32.xlu0 %v631_v22 }
 0x1bd   : > { %v633_v26 = vpop.xlane.xlu0 %632 }
 0x1be   : > { %v634_v27 = vmax.f32 %v629_v25, %v633_v26 }
 0x1c0   : > { %v635_v28 = vsub.f32 %v629_v25, %v634_v27  ;;  %686 = vst.msk [vmem:[#allocation3] sm:$0xff] %vm369_vm1, %v634_v27  ;;  %640 = vperm.xlu0 %984, %v634_v27  }
 0x1c2   : > { %v636_v35 = vmul.f32 1.442695, %v635_v28 }
 0x232   : > { %v641_v30 = vpop.permute.xlu0 %640 }
 0x233   : > { %v643_v31 = vsub.f32 %v628_v21, %v641_v30 }
 0x235   : > { %v644_v32 = vmul.f32 1.442695, %v643_v31 }
 0x237   : > { %987 = vpow2.f32 %v644_v32 }
 0x238   : > { %989 = vpow2.f32 %v636_v35 }
 0x23d   : > { %v988_v33 = vpop.eup %987 }
 0x23e   : > { %876 = vmatmul.msk.f32.vlgmr.msrb.gmra.mxu3 %vm630_vm3, %v988_v33  ;;  %v648_v34 = vsel %vm630_vm3, %v988_v33, 0.0  ;;  %v990_v36 = vpop.eup %989 }
 0x23f   : > { %649 = vadd.xlane.f32.xlu1 %v648_v34  ;;  %v647_v38 = vmul.f32 %v990_v36, %v646_v37 }
 0x258   : > { %657 = vperm.xlu1 %985, %v990_v36  }
 0x2b2   : > { %v650_v39 = vpop.xlane.xlu1 %649 }
 0x2b3   : > { %v651_v40 = vadd.f32 %v650_v39, %v647_v38 }
 0x2b5   : > { %653 = vst.msk [vmem:[#allocation4] sm:$0xff] %vm369_vm1, %v651_v40 }
 0x2bc   : > { %v690_v41 = vld [vmem:[#allocation4] sm:$0xff] }
 0x2bd   : > { %991 = vrcp.f32 %v690_v41 }
 0x2c1   : > { %v681_v45 = vpop.f32.mrf.mxu3 }
 0x2c3   : > { %v992_v42 = vpop.eup %991 }
 0x2c4   : > { %695 = vperm.xlu2 %986, %v992_v42  }
 0x2ca   : > { %v658_v43 = vpop.permute.xlu1 %657 }
 0x2cb   : > { %v660_v44 = vmul.f32 0.0, %v658_v43 }
 0x2cd   : > { %v684_v46 = vadd.f32 %v681_v45, %v660_v44 }
 0x31e   : > { %v696_v47 = vpop.permute.xlu2 %695 }
 0x31f   : > { %v698_v48 = vmul.f32 %v696_v47, %v684_v46 }
 0x321   : > { %699 = vst [vmem:[%s362_s11] sm:$0xff] %v698_v48 }
 0x322   : > { %1170 = shalt.err (!%p1167_p13)
}
 0x323   : > { %897 = dma.vmem_to_hbm [thread:$0]  (%p1364_p4), %s715_s12, 128, %s717_s15, %s701_s16  }
 0x324 PF: > { %s728_s30 = sand.u32 1, %s1217_s18   ;;  %p917_p0 = pnand %p858_p6, %p1372_p7 }
 0x325   : > { %s729_s13 = scalar_lea.sflag [#allocation8], %s728_s30 }
 0x326   : > { %p918_p2 = pneg %p917_p0 }
 0x328   : > { %1212 = dma.done.wait (%p918_p2), %s729_s13, 128  }
 0x329   : > { %1214 = vsyncadd (%p918_p2), %s729_s13, 4294967168  ;;  %s25_s23 = sadd.s32 1, %s1237_s23   ;;  %s1487_s4 = sld [smem:[#allocation23_spill]] }
 0x32a   : > { %p22_p5 = scmp.ge.s32.totalorder %s25_s23, 4   ;;  %s1488_s21 = sld [smem:[#allocation21_spill]] }
 0x32b   : > { %s1489_s22 = sld [smem:[#allocation22_spill]]  ;;  %s1490_s18 = smov %s1221_s19 }
 0x32c   : > { %s1491_s19 = smov %s1225_s20  ;;  %24 = sbr.rel (!%p22_p5) target bundleno = 13 (0xd), region = 126 }
 0x32f   : > { %s1492_s20 = smov %s1487_s4 }
 0x331   :  { %735 = vsyncpa [#allocation7], 1 }
 0x332   :  { %737 = vsyncpa [#allocation7 + $0x1], 1 }
 0x333   :  { %738 = vsyncpa [#allocation10], 1 }
 0x334   :  { %740 = vsyncpa [#allocation10 + $0x1], 1 }
 0x335   :  { %741 = vsyncpa [#allocation13], 1 }
 0x336   :  { %742 = vsyncpa [#allocation8], 1 }
 0x337   :  { %744 = vsyncpa [#allocation8 + $0x1], 1 }

</bundles_post_ra>
